<compile_context>
chip_gen: v6e
topology: v6e:2x2x1
jax: 0.10.0
libtpu: 0.0.40
codegen_flags: <defaults>
</compile_context>

<pallas_src>
import functools

import jax
import jax.numpy as jnp
from jax import lax
from jax.experimental import pallas as pl
from jax.experimental.pallas import tpu as pltpu

_LANES = 128
_SUBLANES = 8
_CHUNK_ROWS = 256          # per-chunk temporaries stay ~128 KiB (f32); no 512 KiB temps
_DEF_BLOCK_ROWS = 1024     # 1024x128 f32 = 512 KiB / input buffer (double-buffered ~2 MiB)
_NUM_CORES = 2             # v7x megacore split; harmless extra grid axis on v5e/v6e


def _sublane_multiple(dtype):
    """Row granularity of one packed sublane tile: 8 (f32), 16 (bf16), 32 (int8/bool)."""
    itemsize = jnp.dtype(dtype).itemsize
    return _SUBLANES * max(1, 4 // itemsize)


def _chunk_plan(block_rows):
    chunks, r = [], 0
    while r < block_rows:
        sz = min(_CHUNK_ROWS, block_rows - r)
        chunks.append((r, sz))
        r += sz
    return tuple(chunks)


def _loss_sums_kernel(yt_ref, yp_ref, out_ref, *, alpha, smooth, chunks,
                      total_blocks, blocks_per_core, need_skip, tail_valid):
    """Accumulates 4 partial sums into a per-core VMEM-resident (4, 8, 128) block.

    out_ref[0] += sum(w * yt * log(yp + smooth))      (per sublane/lane slot)
    out_ref[1] += sum(w * yt)
    out_ref[2] += sum(w * (1 - yt) * log(1 - yp + smooth))
    out_ref[3] += sum(w)
    """
    c = pl.program_id(0)            # core slot  (parallel axis)
    i = pl.program_id(1)            # block within this core (arbitrary / reduction axis)
    g = c * blocks_per_core + i     # global block index

    @pl.when(i == 0)
    def _():
        out_ref[...] = jnp.zeros_like(out_ref)

    def accumulate(valid_count):
        acc = [jnp.zeros((_SUBLANES, _LANES), jnp.float32) for _ in range(4)]
        for r0, sz in chunks:
            yt = yt_ref[r0:r0 + sz, :].astype(jnp.float32)
            yp = yp_ref[r0:r0 + sz, :].astype(jnp.float32)
            if valid_count is not None:
                # Ragged tail block: mask elements whose flat index within the
                # block is >= valid_count.  yp forced to 0.5 keeps both logs
                # finite on garbage lanes; w forced to 0 makes them contribute 0.
                row = lax.broadcasted_iota(jnp.int32, (sz, _LANES), 0)
                lane = lax.broadcasted_iota(jnp.int32, (sz, _LANES), 1)
                valid = (r0 + row) * _LANES + lane < valid_count
                yt = jnp.where(valid, yt, 0.0)
                yp = jnp.where(valid, yp, 0.5)

            w = jnp.round(jnp.abs(yt - yp) + alpha)   # round-half-to-even == torch.round
            if valid_count is not None:
                w = jnp.where(valid, w, 0.0)

            wy = w * yt
            t1 = wy * jnp.log(yp + smooth)
            t3 = (w - wy) * jnp.log(1.0 - yp + smooth)

            def vsum(x, sz=sz):
                # (sz, 128) -> (sz//8, 8, 128): tile-aligned reshape + pure
                # elementwise (VPU) reduction over whole vregs (no XLU reduce).
                return jnp.sum(x.reshape(sz // _SUBLANES, _SUBLANES, _LANES), axis=0)

            acc[0] += vsum(t1)
            acc[1] += vsum(wy)
            acc[2] += vsum(t3)
            acc[3] += vsum(w)

        out_ref[0] += acc[0]
        out_ref[1] += acc[1]
        out_ref[2] += acc[2]
        out_ref[3] += acc[3]

    last = total_blocks - 1
    if tail_valid is None:
        if need_skip:
            @pl.when(g < total_blocks)
            def _():
                accumulate(None)
        else:
            accumulate(None)
    else:
        @pl.when(g < last)
        def _():
            accumulate(None)

        @pl.when(g == last)
        def _():
            accumulate(tail_valid)


def _plain_sums(yt, yp, alpha, smooth):
    """Plain-JAX partial sums for the (< sm*128 element) ragged tail."""
    yt = yt.astype(jnp.float32)
    yp = yp.astype(jnp.float32)
    w = jnp.round(jnp.abs(yt - yp) + alpha)
    wy = w * yt
    return (jnp.sum(wy * jnp.log(yp + smooth)),
            jnp.sum(wy),
            jnp.sum((w - wy) * jnp.log(1.0 - yp + smooth)),
            jnp.sum(w))


def dropoutput_loss(y_true, y_pred, alpha=0.4, *, block_rows=None):
    """Exact equivalent of dropoutput_layer.forward(y_true, y_pred, alpha)."""
    smooth = 1e-6
    n = y_true.size

    # Stream the ORIGINAL dtypes into the kernel; the f32 cast happens in-kernel.
    yt = jnp.ravel(y_true)
    yp = jnp.ravel(y_pred)

    sm = max(_sublane_multiple(yt.dtype), _sublane_multiple(yp.dtype))
    rows_kernel = (n // _LANES // sm) * sm      # lane- and sublane-aligned prefix
    n_kernel = rows_kernel * _LANES

    s1 = jnp.float32(0.0)
    s_wy = jnp.float32(0.0)
    s3 = jnp.float32(0.0)
    s_w = jnp.float32(0.0)

    if n_kernel:
        # Aligned prefix: a free reshape on the aligned hot path; no jnp.pad copy.
        yt_k = yt if n_kernel == n else lax.slice(yt, (0,), (n_kernel,))
        yp_k = yp if n_kernel == n else lax.slice(yp, (0,), (n_kernel,))
        yt2 = yt_k.reshape(rows_kernel, _LANES)
        yp2 = yp_k.reshape(rows_kernel, _LANES)

        if block_rows is None:
            br = min(_DEF_BLOCK_ROWS, rows_kernel)
        else:
            br = min(max(sm, (int(block_rows) // sm) * sm), rows_kernel)
        total_blocks = -(-rows_kernel // br)
        coverage = total_blocks * br * _LANES
        tail_valid = (None if coverage == n_kernel
                      else n_kernel - (total_blocks - 1) * br * _LANES)

        num_cores = _NUM_CORES if total_blocks >= _NUM_CORES else 1
        blocks_per_core = -(-total_blocks // num_cores)
        need_skip = blocks_per_core * num_cores != total_blocks

        if need_skip:
            def in_map(c, i):
                # Clamp so the duplicated trailing block stays in-bounds; the
                # kernel skips its contribution.
                return (jnp.minimum(c * blocks_per_core + i, total_blocks - 1), 0)
        else:
            def in_map(c, i):
                return (c * blocks_per_core + i, 0)

        kernel = functools.partial(
            _loss_sums_kernel,
            alpha=float(alpha), smooth=smooth, chunks=_chunk_plan(br),
            total_blocks=total_blocks, blocks_per_core=blocks_per_core,
            need_skip=need_skip, tail_valid=tail_valid)

        partial_sums = pl.pallas_call(
            kernel,
            out_shape=jax.ShapeDtypeStruct((num_cores, 4, _SUBLANES, _LANES),
                                           jnp.float32),
            grid_spec=pltpu.PrefetchScalarGridSpec(
                num_scalar_prefetch=0,
                grid=(num_cores, blocks_per_core),
                in_specs=[
                    pl.BlockSpec((br, _LANES), in_map),
                    pl.BlockSpec((br, _LANES), in_map),
                ],
                out_specs=pl.BlockSpec((None, 4, _SUBLANES, _LANES),
                                       lambda c, i: (c, 0, 0, 0)),
            ),
            compiler_params=pltpu.CompilerParams(
                dimension_semantics=("parallel", "arbitrary")),
            cost_estimate=pl.CostEstimate(
                flops=12 * n_kernel,
                transcendentals=2 * n_kernel,
                bytes_accessed=(n_kernel * (yt2.dtype.itemsize + yp2.dtype.itemsize)
                                + 4 * num_cores * 4 * _SUBLANES * _LANES),
            ),
        )(yt2, yp2)

        sums = jnp.sum(partial_sums, axis=(0, 2, 3))   # reduce cores+sublanes+lanes
        s1 += sums[0]
        s_wy += sums[1]
        s3 += sums[2]
        s_w += sums[3]

    if n_kernel < n:
        # Ragged tail: folded in with plain JAX — no pad copy of the full arrays.
        t1, twy, t3, tw = _plain_sums(yt[n_kernel:], yp[n_kernel:], alpha, smooth)
        s1 += t1
        s_wy += twy
        s3 += t3
        s_w += tw

    # PyTorch computes sum(x + smooth): the per-element smooth sums to n*smooth
    # with the TRUE element count (never a padded count).
    den1 = s_wy + n * smooth
    den2 = (s_w - s_wy) + n * smooth
    return -(s1 / den1 + s3 / den2) / 2.0


def _reference(y_true, y_pred, alpha=0.4):
    smooth = 1e-6
    y_true = y_true.astype(jnp.float32)
    y_pred = y_pred.astype(jnp.float32)
    w = jnp.round(jnp.abs(y_true - y_pred) + alpha)
    return -(
        jnp.sum(w * y_true * jnp.log(y_pred + smooth)) / jnp.sum(w * y_true + smooth)
        + jnp.sum(w * (1 - y_true) * jnp.log(1 - y_pred + smooth))
        / jnp.sum(w * (1 - y_true) + smooth)
    ) / 2.0


def _check(y_true, y_pred, alpha=0.4, **kw):
    out = jax.block_until_ready(dropoutput_loss(y_true, y_pred, alpha, **kw))
    ref = _reference(y_true, y_pred, alpha)
    assert jnp.allclose(out, ref, rtol=1e-4, atol=1e-5), (float(out), float(ref))


if __name__ == "__main__":
    key = jax.random.PRNGKey(0)
    k1, k2, k3, k4, k5, k6 = jax.random.split(key, 6)

    # Primary case: NCHW-like probability maps, lane-aligned (n = 2048).
    shape = (2, 4, 16, 16)
    y_pred = jax.random.uniform(k1, shape, jnp.float32, minval=0.01, maxval=0.99)
    y_true = (jax.random.uniform(k2, shape) > 0.5).astype(jnp.float32)
    _check(y_true, y_pred)

    # Ragged size (n = 1938): aligned prefix through the kernel + plain-JAX tail.
    shape2 = (2, 3, 17, 19)
    yp_r = jax.random.uniform(k3, shape2, jnp.float32, minval=0.01, maxval=0.99)
    yt_r = (jax.random.uniform(k4, shape2) > 0.5).astype(jnp.float32)
    _check(yt_r, yp_r)

    # Multi-block path with forced small blocks: exercises the 2-core "parallel"
    # split, the clamped index map and the in-kernel tail mask.
    shape3 = (4, 4, 32, 32)
    yp_m = jax.random.uniform(k5, shape3, jnp.float32, minval=0.01, maxval=0.99)
    yt_m = (jax.random.uniform(k6, shape3) > 0.5).astype(jnp.float32)
    _check(yt_m, yp_m, block_rows=48)

    # Mixed dtypes streamed without a wrapper-side upcast (bf16 preds, f32 mask).
    _check(y_true, y_pred.astype(jnp.bfloat16))

    print("KERNEL_OK")
</pallas_src>

<mosaic_0001>
module attributes {stable_mosaic.version = 11 : i64} {
  func.func @_loss_sums_kernel(%arg0: i32, %arg1: i32, %arg2: memref<16x128xf32, #tpu.memory_space<vmem>>, %arg3: memref<16x128xf32, #tpu.memory_space<vmem>>, %arg4: memref<1x4x8x128xf32, #tpu.memory_space<vmem>>) attributes {dimension_semantics = [#tpu.dimension_semantics<parallel>, #tpu.dimension_semantics<arbitrary>], iteration_bounds = array<i64: 1, 1>, scalar_prefetch = 0 : i64, scratch_operands = 0 : i64, tpu.core_type = #tpu.core_type<tc>, window_params = [{transform_indices = @transform_0, window_bounds = array<i64: 16, 128>}, {transform_indices = @transform_1, window_bounds = array<i64: 16, 128>}, {transform_indices = @transform_2, window_bounds = array<i64: 1, 4, 8, 128>}]} {
    %c0_i32 = arith.constant 0 : i32
    %0 = arith.cmpi eq, %arg1, %c0_i32 : i32
    %1 = arith.extui %0 : i1 to i32
    %c0_i32_0 = arith.constant 0 : i32
    %2 = arith.cmpi ne, %1, %c0_i32_0 : i32
    scf.if %2 {
      %cst_44 = arith.constant 0.000000e+00 : f32
      %62 = vector.broadcast %cst_44 : f32 to vector<4x8x128xf32>
      %c0_45 = arith.constant 0 : index
      %c0_46 = arith.constant 0 : index
      %c0_47 = arith.constant 0 : index
      %c0_48 = arith.constant 0 : index
      %63 = vector.load %arg4[%c0_45, %c0_46, %c0_47, %c0_48] : memref<1x4x8x128xf32, #tpu.memory_space<vmem>>, vector<1x4x8x128xf32>
      %64 = vector.shape_cast %63 : vector<1x4x8x128xf32> to vector<4x8x128xf32>
      %65 = vector.shape_cast %62 : vector<4x8x128xf32> to vector<1x4x8x128xf32>
      tpu.vector_store %arg4[%c0_45, %c0_46, %c0_47, %c0_48], %65 {strides = array<i32>} : memref<1x4x8x128xf32, #tpu.memory_space<vmem>>, vector<1x4x8x128xf32>,
    } else {
    }
    %cst = arith.constant 0.000000e+00 : f32
    %3 = vector.broadcast %cst : f32 to vector<8x128xf32>
    %cst_1 = arith.constant 0.000000e+00 : f32
    %4 = vector.broadcast %cst_1 : f32 to vector<8x128xf32>
    %cst_2 = arith.constant 0.000000e+00 : f32
    %5 = vector.broadcast %cst_2 : f32 to vector<8x128xf32>
    %cst_3 = arith.constant 0.000000e+00 : f32
    %6 = vector.broadcast %cst_3 : f32 to vector<8x128xf32>
    %c0 = arith.constant 0 : index
    %c0_4 = arith.constant 0 : index
    %7 = vector.load %arg2[%c0, %c0_4] : memref<16x128xf32, #tpu.memory_space<vmem>>, vector<16x128xf32>
    %c0_5 = arith.constant 0 : index
    %c0_6 = arith.constant 0 : index
    %8 = vector.load %arg3[%c0_5, %c0_6] : memref<16x128xf32, #tpu.memory_space<vmem>>, vector<16x128xf32>
    %9 = arith.subf %7, %8 : vector<16x128xf32>
    %10 = math.absf %9 : vector<16x128xf32>
    %cst_7 = arith.constant 4.000000e-01 : f32
    %11 = vector.broadcast %cst_7 : f32 to vector<16x128xf32>
    %12 = arith.addf %10, %11 : vector<16x128xf32>
    %13 = math.roundeven %12 : vector<16x128xf32>
    %14 = arith.mulf %13, %7 : vector<16x128xf32>
    %cst_8 = arith.constant 9.99999997E-7 : f32
    %15 = vector.broadcast %cst_8 : f32 to vector<16x128xf32>
    %16 = arith.addf %8, %15 : vector<16x128xf32>
    %17 = math.log %16 : vector<16x128xf32>
    %18 = arith.mulf %14, %17 : vector<16x128xf32>
    %19 = arith.subf %13, %14 : vector<16x128xf32>
    %cst_9 = arith.constant 1.000000e+00 : f32
    %20 = vector.broadcast %cst_9 : f32 to vector<16x128xf32>
    %21 = arith.subf %20, %8 : vector<16x128xf32>
    %cst_10 = arith.constant 9.99999997E-7 : f32
    %22 = vector.broadcast %cst_10 : f32 to vector<16x128xf32>
    %23 = arith.addf %21, %22 : vector<16x128xf32>
    %24 = math.log %23 : vector<16x128xf32>
    %25 = arith.mulf %19, %24 : vector<16x128xf32>
    %26 = vector.shape_cast %18 : vector<16x128xf32> to vector<2x8x128xf32>
    %cst_11 = arith.constant dense<0.000000e+00> : vector<8x128xf32>
    %27 = vector.multi_reduction <add>, %26, %cst_11 [0] : vector<2x8x128xf32> to vector<8x128xf32>
    %28 = arith.addf %3, %27 : vector<8x128xf32>
    %29 = vector.shape_cast %14 : vector<16x128xf32> to vector<2x8x128xf32>
    %cst_12 = arith.constant dense<0.000000e+00> : vector<8x128xf32>
    %30 = vector.multi_reduction <add>, %29, %cst_12 [0] : vector<2x8x128xf32> to vector<8x128xf32>
    %31 = arith.addf %4, %30 : vector<8x128xf32>
    %32 = vector.shape_cast %25 : vector<16x128xf32> to vector<2x8x128xf32>
    %cst_13 = arith.constant dense<0.000000e+00> : vector<8x128xf32>
    %33 = vector.multi_reduction <add>, %32, %cst_13 [0] : vector<2x8x128xf32> to vector<8x128xf32>
    %34 = arith.addf %5, %33 : vector<8x128xf32>
    %35 = vector.shape_cast %13 : vector<16x128xf32> to vector<2x8x128xf32>
    %cst_14 = arith.constant dense<0.000000e+00> : vector<8x128xf32>
    %36 = vector.multi_reduction <add>, %35, %cst_14 [0] : vector<2x8x128xf32> to vector<8x128xf32>
    %37 = arith.addf %6, %36 : vector<8x128xf32>
    %c0_15 = arith.constant 0 : index
    %c0_16 = arith.constant 0 : index
    %c0_17 = arith.constant 0 : index
    %c0_18 = arith.constant 0 : index
    %38 = vector.load %arg4[%c0_15, %c0_16, %c0_17, %c0_18] : memref<1x4x8x128xf32, #tpu.memory_space<vmem>>, vector<1x1x8x128xf32>
    %39 = vector.shape_cast %38 : vector<1x1x8x128xf32> to vector<8x128xf32>
    %40 = arith.addf %39, %28 : vector<8x128xf32>
    %c0_19 = arith.constant 0 : index
    %c0_20 = arith.constant 0 : index
    %c0_21 = arith.constant 0 : index
    %c0_22 = arith.constant 0 : index
    %41 = vector.load %arg4[%c0_19, %c0_20, %c0_21, %c0_22] : memref<1x4x8x128xf32, #tpu.memory_space<vmem>>, vector<1x1x8x128xf32>
    %42 = vector.shape_cast %41 : vector<1x1x8x128xf32> to vector<8x128xf32>
    %43 = vector.shape_cast %40 : vector<8x128xf32> to vector<1x1x8x128xf32>
    tpu.vector_store %arg4[%c0_19, %c0_20, %c0_21, %c0_22], %43 {strides = array<i32>} : memref<1x4x8x128xf32, #tpu.memory_space<vmem>>, vector<1x1x8x128xf32>,
    %c0_23 = arith.constant 0 : index
    %c1 = arith.constant 1 : index
    %c0_24 = arith.constant 0 : index
    %c0_25 = arith.constant 0 : index
    %44 = vector.load %arg4[%c0_23, %c1, %c0_24, %c0_25] : memref<1x4x8x128xf32, #tpu.memory_space<vmem>>, vector<1x1x8x128xf32>
    %45 = vector.shape_cast %44 : vector<1x1x8x128xf32> to vector<8x128xf32>
    %46 = arith.addf %45, %31 : vector<8x128xf32>
    %c0_26 = arith.constant 0 : index
    %c1_27 = arith.constant 1 : index
    %c0_28 = arith.constant 0 : index
    %c0_29 = arith.constant 0 : index
    %47 = vector.load %arg4[%c0_26, %c1_27, %c0_28, %c0_29] : memref<1x4x8x128xf32, #tpu.memory_space<vmem>>, vector<1x1x8x128xf32>
    %48 = vector.shape_cast %47 : vector<1x1x8x128xf32> to vector<8x128xf32>
    %49 = vector.shape_cast %46 : vector<8x128xf32> to vector<1x1x8x128xf32>
    tpu.vector_store %arg4[%c0_26, %c1_27, %c0_28, %c0_29], %49 {strides = array<i32>} : memref<1x4x8x128xf32, #tpu.memory_space<vmem>>, vector<1x1x8x128xf32>,
    %c0_30 = arith.constant 0 : index
    %c2 = arith.constant 2 : index
    %c0_31 = arith.constant 0 : index
    %c0_32 = arith.constant 0 : index
    %50 = vector.load %arg4[%c0_30, %c2, %c0_31, %c0_32] : memref<1x4x8x128xf32, #tpu.memory_space<vmem>>, vector<1x1x8x128xf32>
    %51 = vector.shape_cast %50 : vector<1x1x8x128xf32> to vector<8x128xf32>
    %52 = arith.addf %51, %34 : vector<8x128xf32>
    %c0_33 = arith.constant 0 : index
    %c2_34 = arith.constant 2 : index
    %c0_35 = arith.constant 0 : index
    %c0_36 = arith.constant 0 : index
    %53 = vector.load %arg4[%c0_33, %c2_34, %c0_35, %c0_36] : memref<1x4x8x128xf32, #tpu.memory_space<vmem>>, vector<1x1x8x128xf32>
    %54 = vector.shape_cast %53 : vector<1x1x8x128xf32> to vector<8x128xf32>
    %55 = vector.shape_cast %52 : vector<8x128xf32> to vector<1x1x8x128xf32>
    tpu.vector_store %arg4[%c0_33, %c2_34, %c0_35, %c0_36], %55 {strides = array<i32>} : memref<1x4x8x128xf32, #tpu.memory_space<vmem>>, vector<1x1x8x128xf32>,
    %c0_37 = arith.constant 0 : index
    %c3 = arith.constant 3 : index
    %c0_38 = arith.constant 0 : index
    %c0_39 = arith.constant 0 : index
    %56 = vector.load %arg4[%c0_37, %c3, %c0_38, %c0_39] : memref<1x4x8x128xf32, #tpu.memory_space<vmem>>, vector<1x1x8x128xf32>
    %57 = vector.shape_cast %56 : vector<1x1x8x128xf32> to vector<8x128xf32>
    %58 = arith.addf %57, %37 : vector<8x128xf32>
    %c0_40 = arith.constant 0 : index
    %c3_41 = arith.constant 3 : index
    %c0_42 = arith.constant 0 : index
    %c0_43 = arith.constant 0 : index
    %59 = vector.load %arg4[%c0_40, %c3_41, %c0_42, %c0_43] : memref<1x4x8x128xf32, #tpu.memory_space<vmem>>, vector<1x1x8x128xf32>
    %60 = vector.shape_cast %59 : vector<1x1x8x128xf32> to vector<8x128xf32>
    %61 = vector.shape_cast %58 : vector<8x128xf32> to vector<1x1x8x128xf32>
    tpu.vector_store %arg4[%c0_40, %c3_41, %c0_42, %c0_43], %61 {strides = array<i32>} : memref<1x4x8x128xf32, #tpu.memory_space<vmem>>, vector<1x1x8x128xf32>,
    return
  }
  func.func @transform_0(%arg0: i32, %arg1: i32) -> (i32, i32) {
    %c1_i32 = arith.constant 1 : i32
    %0 = arith.muli %arg0, %c1_i32 : i32
    %1 = arith.addi %0, %arg1 : i32
    %c0_i32 = arith.constant 0 : i32
    %c0_i32_0 = arith.constant 0 : i32
    return %1, %c0_i32 : i32, i32
  }
  func.func @transform_1(%arg0: i32, %arg1: i32) -> (i32, i32) {
    %c1_i32 = arith.constant 1 : i32
    %0 = arith.muli %arg0, %c1_i32 : i32
    %1 = arith.addi %0, %arg1 : i32
    %c0_i32 = arith.constant 0 : i32
    %c0_i32_0 = arith.constant 0 : i32
    return %1, %c0_i32 : i32, i32
  }
  func.func @transform_2(%arg0: i32, %arg1: i32) -> (i32, i32, i32, i32) {
    %c0_i32 = arith.constant 0 : i32
    %c0_i32_0 = arith.constant 0 : i32
    %c0_i32_1 = arith.constant 0 : i32
    %c0_i32_2 = arith.constant 0 : i32
    return %arg0, %c0_i32, %c0_i32_0, %c0_i32_1 : i32, i32, i32, i32
  }
}

</mosaic_0001>

<bundles_post_ra>
// kernel: tpu_custom_call.1
= control target key start
LH: loop header
LB: loop body
LE: loop exit
PB: predicated region body
PF: predicated region fallthrough
CT: control target
= control target key end

     0   :  { %7 = vsyncpa [#allocation3], 0  ;;  %s269_s0 = inlined_call_operand.hbm [shape: f32[16,128], index: 0, kind: input, shape index: {}]   ;;  %s270_s1 = inlined_call_operand.hbm [shape: f32[16,128], index: 1, kind: input, shape index: {}]   ;;  %s271_s2 = inlined_call_operand.hbm [shape: f32[1,4,8,128], index: 2, kind: output, shape index: {}]  }
   0x1   :  { %8 = vsyncpa [#allocation6], 0 }
   0x2   :  { %9 = vsyncpa [#allocation4], 0  ;;  %s231_s9 = smov [#allocation2]  }
   0x3   :  { %s19_s10 = sshll.u32 %s231_s9, 4  ;;  %s20_s10 = int_to_ptr.vmem [resolvable:$true] %s19_s10 }
   0x4   :  { %s173_s11 = scalar_lea.vmem %s20_s10, 256  ;;  %p178_p1 = scmp.lt.s32.totalorder %s20_s10, %s20_s10 }
   0x5   :  { %p174_p0 = scmp.ne.s32.totalorder %s20_s10, %s173_s11  ;;  %p179_p2 = scmp.lt.s32.totalorder %s173_s11, %s173_s11 }
   0x7   :  { %p180_p3 = por %p179_p2, %p178_p1 }
   0x9   :  { %p181_p4 = pnand %p180_p3, %p174_p0 }
   0xb   :  { %184 = shalt.err (!%p181_p4)
}
   0xc   :  { %s232_s12 = smov 128   ;;  %s233_s13 = smov 8  }
   0xd   :  { %25 = dma.hbm_to_vmem [thread:$0]  %s269_s0, 256, %s20_s10, [#allocation3], %s232_s12, %s232_s12, %s233_s13  }
   0xe   :  { %s234_s16 = smov [#allocation5]  }
   0xf   :  { %s35_s17 = sshll.u32 %s234_s16, 4  ;;  %s36_s17 = int_to_ptr.vmem [resolvable:$true] %s35_s17 }
  0x10   :  { %s193_s18 = scalar_lea.vmem %s36_s17, 256  ;;  %p198_p6 = scmp.lt.s32.totalorder %s36_s17, %s36_s17 }
  0x11   :  { %p194_p5 = scmp.ne.s32.totalorder %s36_s17, %s193_s18  ;;  %p199_p7 = scmp.lt.s32.totalorder %s193_s18, %s193_s18 }
  0x13   :  { %p200_p8 = por %p199_p7, %p198_p6 }
  0x15   :  { %p201_p9 = pnand %p200_p8, %p194_p5 }
  0x17   :  { %204 = shalt.err (!%p201_p9)
}
  0x18   :  { %41 = dma.hbm_to_vmem [thread:$0]  %s270_s1, 256, %s36_s17, [#allocation6], %s232_s12, %s232_s12, %s233_s13  }
  0x19   :  { %225 = dma.done.wait [#allocation3], 256  }
  0x1a   :  { %226 = vsyncadd [#allocation3], 4294967040 }
  0x1b   :  { %227 = dma.done.wait [#allocation6], 256  }
  0x1c   :  { %228 = vsyncadd [#allocation6], 4294967040  ;;  %v60_v0 = vld [vmem:[#allocation2] sm:$0xff]  ;;  %v61_v1 = vld [vmem:[#allocation2 + $0x8] sm:$0xff]  ;;  %s235_s0 = smov [#allocation7]  }
  0x1d   :  { %v62_v2 = vld [vmem:[#allocation5] sm:$0xff]  ;;  %v63_v3 = vld [vmem:[#allocation5 + $0x8] sm:$0xff]  ;;  %s122_s1 = sshll.u32 %s235_s0, 4  ;;  %s123_s1 = int_to_ptr.vmem [resolvable:$true] %s122_s1 }
  0x1e   :  { %v64_v4 = vsub.f32 %v60_v0, %v62_v2  ;;  %v74_v5 = vadd.f32 1e-06, %v62_v2  ;;  %v84_v6 = vsub.f32 1.0, %v62_v2  ;;  %v65_v7 = vsub.f32 %v61_v1, %v63_v3  ;;  %s205_s21 = scalar_lea.vmem %s123_s1, 512  ;;  %p210_p11 = scmp.lt.s32.totalorder %s123_s1, %s123_s1 }
  0x1f   :  { %v75_v8 = vadd.f32 1e-06, %v63_v3  ;;  %v85_v9 = vsub.f32 1.0, %v63_v3  ;;  %p206_p10 = scmp.ne.s32.totalorder %s123_s1, %s205_s21  ;;  %p211_p12 = scmp.lt.s32.totalorder %s205_s21, %s205_s21 }
  0x20   :  { %v66_v10 = vand.u32 2147483647, %v64_v4  ;;  %157 = vlog2.f32 %v74_v5  ;;  %v86_v11 = vadd.f32 1e-06, %v84_v6  ;;  %v67_v12 = vand.u32 2147483647, %v65_v7 }
  0x21   :  { %159 = vlog2.f32 %v75_v8  ;;  %v87_v13 = vadd.f32 1e-06, %v85_v9  ;;  %p212_p13 = por %p211_p12, %p210_p11 }
  0x22   :  { %v68_v14 = vadd.f32 0.4, %v66_v10  ;;  %161 = vlog2.f32 %v86_v11  ;;  %v69_v15 = vadd.f32 0.4, %v67_v12 }
  0x23   :  { %163 = vlog2.f32 %v87_v13  ;;  %p213_p0 = pnand %p212_p13, %p206_p10 }
  0x24   :  { %v137_v16 = vcvt.f32.s32 %v68_v14  ;;  %v135_v17 = vand.u32 2147483647, %v68_v14  ;;  %v145_v18 = vcvt.f32.s32 %v69_v15  ;;  %v140_v20 = vand.u32 2147483648, %v68_v14 }
  0x25   :  { %v143_v21 = vand.u32 2147483647, %v69_v15  ;;  %v148_v23 = vand.u32 2147483648, %v69_v15 }
  0x26   :  { %v138_v19 = vcvt.s32.f32 %v137_v16  ;;  %v146_v22 = vcvt.s32.f32 %v145_v18  ;;  %vm136_vm0 = vcmp.lt.f32.partialorder %v135_v17, 8388608.0 }
  0x27   :  { %vm144_vm1 = vcmp.lt.f32.partialorder %v143_v21, 8388608.0 }
  0x28   :  { %v139_v24 = vand.u32 2147483647, %v138_v19  ;;  %v147_v25 = vand.u32 2147483647, %v146_v22 }
  0x2a   :  { %v141_v26 = vor.u32 %v140_v20, %v139_v24  ;;  %v149_v27 = vor.u32 %v148_v23, %v147_v25 }
  0x2c   :  { %v142_v28 = vsel %vm136_vm0, %v141_v26, %v68_v14  ;;  %v150_v30 = vsel %vm144_vm1, %v149_v27, %v69_v15 }
  0x2d   :  { %v158_v29 = vpop.eup %157  ;;  %v72_v31 = vmul.f32 %v142_v28, %v60_v0  ;;  %v73_v33 = vmul.f32 %v150_v30, %v61_v1  ;;  %v100_v35 = vadd.f32 %v150_v30, %v142_v28 }
  0x2e   :  { %v160_v32 = vpop.eup %159  ;;  %v77_v34 = vmul.f32 0.6931472, %v158_v29 }
  0x2f   :  { %v162_v36 = vpop.eup %161  ;;  %v79_v37 = vmul.f32 0.6931472, %v160_v32  ;;  %v82_v38 = vsub.f32 %v142_v28, %v72_v31  ;;  %v96_v41 = vadd.f32 %v73_v33, %v72_v31  ;;  %v83_v42 = vsub.f32 %v150_v30, %v73_v33  ;;  %116 = vst [vmem:[#allocation7 + $0x18] sm:$0xff] %v100_v35 }
  0x30   :  { %v164_v39 = vpop.eup %163  ;;  %v80_v40 = vmul.f32 %v77_v34, %v72_v31  ;;  %v89_v43 = vmul.f32 0.6931472, %v162_v36 }
  0x31   :  { %v81_v44 = vmul.f32 %v79_v37, %v73_v33  ;;  %v91_v45 = vmul.f32 0.6931472, %v164_v39  ;;  %108 = vst [vmem:[#allocation7 + $0x8] sm:$0xff] %v96_v41 }
  0x32   :  { %v92_v46 = vmul.f32 %v89_v43, %v82_v38 }
  0x33   :  { %v94_v47 = vadd.f32 %v81_v44, %v80_v40  ;;  %v93_v48 = vmul.f32 %v91_v45, %v83_v42 }
  0x35   :  { %v98_v49 = vadd.f32 %v93_v48, %v92_v46  ;;  %104 = vst [vmem:[#allocation7] sm:$0xff] %v94_v47 }
  0x37   :  { %112 = vst [vmem:[#allocation7 + $0x10] sm:$0xff] %v98_v49 }
  0x38   :  { %216 = shalt.err (!%p213_p0)
}
  0x39   :  { %128 = dma.vmem_to_hbm [thread:$0]  %s123_s1, 512, %s271_s2, [#allocation4], %s232_s12, %s232_s12, %s233_s13  }
  0x3a   :  { %229 = dma.done.wait [#allocation4], 512  }
  0x3b   :  { %230 = vsyncadd [#allocation4], 4294966784 }
  0x3c   :  { %132 = vsyncpa [#allocation3], 1 }
  0x3d   :  { %133 = vsyncpa [#allocation6], 1 }
  0x3e   :  { %134 = vsyncpa [#allocation4], 1 }

</bundles_post_ra>
